<compile_context>
chip_gen: v5e
topology: v5e:2x2
jax: 0.10.0
libtpu: 0.0.40
codegen_flags: <defaults>
</compile_context>

<pallas_src>
import math
from typing import NamedTuple

import jax
import jax.numpy as jnp
from jax.experimental import pallas as pl
from jax.experimental.pallas import tpu as pltpu


_PAD_NEG = -1e30  # finite "minus infinity" for masked softmax lanes


def _round_up(x: int, m: int) -> int:
    return (x + m - 1) // m * m


# ----------------------------------------------------------------------------
# Kernel
# ----------------------------------------------------------------------------
def actor_kernel(s_ref, w1_ref, b1_ref, w2_ref, b2_ref, w3_ref, b3_ref, o_ref):
    # Layer 1: Linear (bf16 MXU, f32 accumulate) + bias + ReLU in f32
    h1 = jnp.dot(s_ref[...], w1_ref[...], preferred_element_type=jnp.float32)
    h1 = jnp.maximum(h1 + b1_ref[...], 0.0)

    # Layer 2: Linear + ReLU
    h2 = jnp.dot(h1.astype(jnp.bfloat16), w2_ref[...],
                 preferred_element_type=jnp.float32)
    h2 = jnp.maximum(h2 + b2_ref[...], 0.0)

    # Layer 3: Linear -> numerically-stable softmax (all f32).
    # Padded action lanes already carry -1e30 in b3, so no in-kernel mask.
    logits = jnp.dot(h2.astype(jnp.bfloat16), w3_ref[...],
                     preferred_element_type=jnp.float32)
    logits = logits + b3_ref[...]

    m = jnp.max(logits, axis=-1, keepdims=True)
    e = jnp.exp(logits - m)
    denom = jnp.sum(e, axis=-1, keepdims=True)
    # Exact divide: rows sum to 1 to f32 precision; off the MXU critical path.
    o_ref[...] = (e / denom).astype(o_ref.dtype)


# ----------------------------------------------------------------------------
# One-time parameter preparation (pad + bf16 cast, cached by the caller)
# ----------------------------------------------------------------------------
class PreparedActorParams(NamedTuple):
    w1: jax.Array
    b1: jax.Array
    w2: jax.Array
    b2: jax.Array
    w3: jax.Array
    b3: jax.Array
    state_dims: int
    action_dims: int
    Sp: int
    Hp: int
    Ap: int


def prepare_actor_params(w1, b1, w2, b2, w3, b3) -> PreparedActorParams:
    """Pad feature dims to multiples of 128 and cast matmul operands to bf16.

    Call once and reuse across forward calls so the Hp*Hp weight pad/cast is
    not re-issued (and re-read from HBM) on every inference step.
    """
    S, H = w1.shape
    A = w3.shape[1]
    Sp, Hp, Ap = _round_up(S, 128), _round_up(H, 128), _round_up(A, 128)

    w1_p = jnp.pad(w1, ((0, Sp - S), (0, Hp - H))).astype(jnp.bfloat16)
    w2_p = jnp.pad(w2, ((0, Hp - H), (0, Hp - H))).astype(jnp.bfloat16)
    w3_p = jnp.pad(w3, ((0, Hp - H), (0, Ap - A))).astype(jnp.bfloat16)
    b1_p = jnp.pad(b1, ((0, 0), (0, Hp - H))).astype(jnp.float32)
    b2_p = jnp.pad(b2, ((0, 0), (0, Hp - H))).astype(jnp.float32)
    # Fold the action-lane softmax mask into the bias padding (static guard:
    # disappears entirely when action_dims is already a multiple of 128).
    pad_val = _PAD_NEG if Ap != A else 0.0
    b3_p = jnp.pad(b3, ((0, 0), (0, Ap - A)),
                   constant_values=pad_val).astype(jnp.float32)

    return PreparedActorParams(w1_p, b1_p, w2_p, b2_p, w3_p, b3_p,
                               S, A, Sp, Hp, Ap)


# ----------------------------------------------------------------------------
# Tiling / VMEM heuristics
# ----------------------------------------------------------------------------
def _vmem_bytes_estimate(tm: int, Sp: int, Hp: int, Ap: int) -> int:
    weights = 2 * 2 * (Sp * Hp + Hp * Hp + Hp * Ap)      # bf16, x2 pipeline bufs
    biases = 2 * 4 * (2 * Hp + Ap)                        # f32,  x2 pipeline bufs
    s_tiles = 2 * tm * Sp * 2                             # bf16 input, double-buffered
    o_tiles = 2 * tm * Ap * 4                             # f32 output, double-buffered
    acts = tm * (2 * Hp + Ap) * 4 + tm * 2 * Hp * 2       # f32 h1/h2/logits + bf16 casts
    return weights + biases + s_tiles + o_tiles + acts


def _pick_tm(B: int, Sp: int, Hp: int, Ap: int) -> int:
    if B <= 128:
        # bf16 sublane packing is 16 rows per vreg.
        return _round_up(max(B, 1), 16)
    if B <= 256:
        tm = 128          # >= 2 tiles so both v7x TensorCores get a batch tile
    elif B <= 1024:
        tm = 256
    else:
        tm = 512          # fewer grid steps / longer MXU bursts on v5e/v6e
    # Shrink if the padded activations + tiles would overflow VMEM (v7x: 64 MiB).
    budget = 48 << 20
    while tm > 128 and _vmem_bytes_estimate(tm, Sp, Hp, Ap) > budget:
        tm //= 2
    return tm


# ----------------------------------------------------------------------------
# Forward
# ----------------------------------------------------------------------------
def actor_forward(s, params: PreparedActorParams):
    """Fused Actor forward. s: (B, state_dims) f32 -> (B, action_dims) f32."""
    B, S = s.shape
    assert S == params.state_dims
    Sp, Hp, Ap = params.Sp, params.Hp, params.Ap
    A = params.action_dims

    TM = _pick_tm(B, Sp, Hp, Ap)
    Bp = _round_up(B, TM)

    # Only the activation is padded / cast per call; weights were prepared once.
    s_p = jnp.pad(s, ((0, Bp - B), (0, Sp - S))).astype(jnp.bfloat16)

    grid = (Bp // TM,)

    flops = 2 * Bp * (Sp * Hp + Hp * Hp + Hp * Ap)
    bytes_accessed = (
        Bp * Sp * 2                                  # streamed input (bf16)
        + (Sp * Hp + Hp * Hp + Hp * Ap) * 2          # weights (bf16)
        + (2 * Hp + Ap) * 4                          # biases (f32)
        + Bp * Ap * 4                                # output (f32)
    )
    need = _vmem_bytes_estimate(TM, Sp, Hp, Ap)
    vmem_limit = int(min(max(need + (8 << 20), 32 << 20), 112 << 20))

    out_padded = pl.pallas_call(
        actor_kernel,
        out_shape=jax.ShapeDtypeStruct((Bp, Ap), jnp.float32),
        grid=grid,
        in_specs=[
            pl.BlockSpec((TM, Sp), lambda i: (i, 0)),   # batch tile streams
            pl.BlockSpec((Sp, Hp), lambda i: (0, 0)),   # weights stay VMEM-resident
            pl.BlockSpec((1, Hp), lambda i: (0, 0)),
            pl.BlockSpec((Hp, Hp), lambda i: (0, 0)),
            pl.BlockSpec((1, Hp), lambda i: (0, 0)),
            pl.BlockSpec((Hp, Ap), lambda i: (0, 0)),
            pl.BlockSpec((1, Ap), lambda i: (0, 0)),
        ],
        out_specs=pl.BlockSpec((TM, Ap), lambda i: (i, 0)),
        compiler_params=pltpu.CompilerParams(
            dimension_semantics=("parallel",),
            vmem_limit_bytes=vmem_limit),
        cost_estimate=pl.CostEstimate(
            flops=flops,
            transcendentals=Bp * Ap,
            bytes_accessed=bytes_accessed),
    )(s_p, params.w1, params.b1, params.w2, params.b2, params.w3, params.b3)

    return out_padded[:B, :A]


# ----------------------------------------------------------------------------
# Init / reference
# ----------------------------------------------------------------------------
def xavier_uniform(key, fan_in, fan_out, gain=1.0):
    bound = gain * math.sqrt(6.0 / (fan_in + fan_out))
    # stored as (in, out) so the kernel can do x @ W directly
    return jax.random.uniform(key, (fan_in, fan_out), jnp.float32, -bound, bound)


def init_actor_params(key, state_dims, action_dims, hidden_dims):
    k1, k2, k3 = jax.random.split(key, 3)
    w1 = xavier_uniform(k1, state_dims, hidden_dims)
    b1 = jnp.full((1, hidden_dims), 0.01, jnp.float32)
    w2 = xavier_uniform(k2, hidden_dims, hidden_dims)
    b2 = jnp.full((1, hidden_dims), 0.01, jnp.float32)
    w3 = xavier_uniform(k3, hidden_dims, action_dims)
    b3 = jnp.full((1, action_dims), 0.01, jnp.float32)
    return w1, b1, w2, b2, w3, b3


def actor_reference(s, w1, b1, w2, b2, w3, b3):
    """Pure-JAX f32 reference for correctness checking."""
    h1 = jnp.maximum(s @ w1 + b1, 0.0)
    h2 = jnp.maximum(h1 @ w2 + b2, 0.0)
    logits = h2 @ w3 + b3
    return jax.nn.softmax(logits, axis=-1)


if __name__ == "__main__":
    # Small shapes consistent with the module's forward: s is (batch, state_dims)
    batch, state_dims, action_dims, hidden_dims = 4, 16, 8, 32

    key = jax.random.PRNGKey(0)
    k_params, k_input = jax.random.split(key)

    raw_params = init_actor_params(k_params, state_dims, action_dims, hidden_dims)
    s = jax.random.normal(k_input, (batch, state_dims), jnp.float32)

    # One-time prep (pad + bf16 cast), then reuse across forward calls.
    prepared = prepare_actor_params(*raw_params)

    probs = actor_forward(s, prepared)
    probs = jax.block_until_ready(probs)

    # sanity: shape, rows sum to ~1 (exact divide in the kernel), and match
    # the f32 reference (bf16 MXU => loose tolerance on values).
    assert probs.shape == (batch, action_dims)
    assert bool(jnp.all(jnp.abs(jnp.sum(probs, axis=-1) - 1.0) < 1e-3))
    ref = actor_reference(s, *raw_params)
    assert bool(jnp.all(jnp.abs(probs - ref) < 2e-2))

    print("KERNEL_OK")
</pallas_src>

<mosaic_0001>
module attributes {stable_mosaic.version = 11 : i64} {
  func.func @actor_kernel(%arg0: i32, %arg1: memref<16x128xbf16, #tpu.memory_space<vmem>>, %arg2: memref<128x128xbf16, #tpu.memory_space<vmem>>, %arg3: memref<1x128xf32, #tpu.memory_space<vmem>>, %arg4: memref<128x128xbf16, #tpu.memory_space<vmem>>, %arg5: memref<1x128xf32, #tpu.memory_space<vmem>>, %arg6: memref<128x128xbf16, #tpu.memory_space<vmem>>, %arg7: memref<1x128xf32, #tpu.memory_space<vmem>>, %arg8: memref<16x128xf32, #tpu.memory_space<vmem>>) attributes {dimension_semantics = [#tpu.dimension_semantics<parallel>], iteration_bounds = array<i64: 1>, scalar_prefetch = 0 : i64, scratch_operands = 0 : i64, tpu.core_type = #tpu.core_type<tc>, window_params = [{transform_indices = @transform_0, window_bounds = array<i64: 16, 128>}, {pipeline_mode = #tpu.pipeline_mode<synchronous>, transform_indices = @transform_1, window_bounds = array<i64: 128, 128>}, {pipeline_mode = #tpu.pipeline_mode<synchronous>, transform_indices = @transform_2, window_bounds = array<i64: 1, 128>}, {pipeline_mode = #tpu.pipeline_mode<synchronous>, transform_indices = @transform_3, window_bounds = array<i64: 128, 128>}, {pipeline_mode = #tpu.pipeline_mode<synchronous>, transform_indices = @transform_4, window_bounds = array<i64: 1, 128>}, {pipeline_mode = #tpu.pipeline_mode<synchronous>, transform_indices = @transform_5, window_bounds = array<i64: 128, 128>}, {pipeline_mode = #tpu.pipeline_mode<synchronous>, transform_indices = @transform_6, window_bounds = array<i64: 1, 128>}, {transform_indices = @transform_7, window_bounds = array<i64: 16, 128>}]} {
    %c0 = arith.constant 0 : index
    %c0_0 = arith.constant 0 : index
    %0 = vector.load %arg1[%c0, %c0_0] : memref<16x128xbf16, #tpu.memory_space<vmem>>, vector<16x128xbf16>
    %c0_1 = arith.constant 0 : index
    %c0_2 = arith.constant 0 : index
    %1 = vector.load %arg2[%c0_1, %c0_2] : memref<128x128xbf16, #tpu.memory_space<vmem>>, vector<128x128xbf16>
    %cst = arith.constant dense<0.000000e+00> : vector<16x128xf32>
    %2 = tpu.matmul %0, %1, %cst {dimension_numbers = #tpu.dot_dimension_numbers<[1], [0], [0], [1], [0, 0, 1, 1], [], []>} : vector<16x128xbf16>, vector<128x128xbf16>, vector<16x128xf32> -> vector<16x128xf32>
    %c0_3 = arith.constant 0 : index
    %c0_4 = arith.constant 0 : index
    %3 = vector.load %arg3[%c0_3, %c0_4] : memref<1x128xf32, #tpu.memory_space<vmem>>, vector<1x128xf32>
    %4 = vector.broadcast %3 : vector<1x128xf32> to vector<16x128xf32>
    %5 = arith.addf %2, %4 : vector<16x128xf32>
    %cst_5 = arith.constant 0.000000e+00 : f32
    %6 = vector.broadcast %cst_5 : f32 to vector<16x128xf32>
    %7 = arith.maximumf %5, %6 : vector<16x128xf32>
    %8 = arith.truncf %7 : vector<16x128xf32> to vector<16x128xbf16>
    %c0_6 = arith.constant 0 : index
    %c0_7 = arith.constant 0 : index
    %9 = vector.load %arg4[%c0_6, %c0_7] : memref<128x128xbf16, #tpu.memory_space<vmem>>, vector<128x128xbf16>
    %cst_8 = arith.constant dense<0.000000e+00> : vector<16x128xf32>
    %10 = tpu.matmul %8, %9, %cst_8 {dimension_numbers = #tpu.dot_dimension_numbers<[1], [0], [0], [1], [0, 0, 1, 1], [], []>} : vector<16x128xbf16>, vector<128x128xbf16>, vector<16x128xf32> -> vector<16x128xf32>
    %c0_9 = arith.constant 0 : index
    %c0_10 = arith.constant 0 : index
    %11 = vector.load %arg5[%c0_9, %c0_10] : memref<1x128xf32, #tpu.memory_space<vmem>>, vector<1x128xf32>
    %12 = vector.broadcast %11 : vector<1x128xf32> to vector<16x128xf32>
    %13 = arith.addf %10, %12 : vector<16x128xf32>
    %cst_11 = arith.constant 0.000000e+00 : f32
    %14 = vector.broadcast %cst_11 : f32 to vector<16x128xf32>
    %15 = arith.maximumf %13, %14 : vector<16x128xf32>
    %16 = arith.truncf %15 : vector<16x128xf32> to vector<16x128xbf16>
    %c0_12 = arith.constant 0 : index
    %c0_13 = arith.constant 0 : index
    %17 = vector.load %arg6[%c0_12, %c0_13] : memref<128x128xbf16, #tpu.memory_space<vmem>>, vector<128x128xbf16>
    %cst_14 = arith.constant dense<0.000000e+00> : vector<16x128xf32>
    %18 = tpu.matmul %16, %17, %cst_14 {dimension_numbers = #tpu.dot_dimension_numbers<[1], [0], [0], [1], [0, 0, 1, 1], [], []>} : vector<16x128xbf16>, vector<128x128xbf16>, vector<16x128xf32> -> vector<16x128xf32>
    %c0_15 = arith.constant 0 : index
    %c0_16 = arith.constant 0 : index
    %19 = vector.load %arg7[%c0_15, %c0_16] : memref<1x128xf32, #tpu.memory_space<vmem>>, vector<1x128xf32>
    %20 = vector.broadcast %19 : vector<1x128xf32> to vector<16x128xf32>
    %21 = arith.addf %18, %20 : vector<16x128xf32>
    %cst_17 = arith.constant dense<0xFF800000> : vector<16xf32>
    %22 = vector.multi_reduction <maximumf>, %21, %cst_17 [1] : vector<16x128xf32> to vector<16xf32>
    %23 = vector.shape_cast %22 : vector<16xf32> to vector<16x1xf32>
    %24 = vector.broadcast %23 : vector<16x1xf32> to vector<16x128xf32>
    %25 = arith.subf %21, %24 : vector<16x128xf32>
    %26 = math.exp %25 : vector<16x128xf32>
    %cst_18 = arith.constant dense<0.000000e+00> : vector<16xf32>
    %27 = vector.multi_reduction <add>, %26, %cst_18 [1] : vector<16x128xf32> to vector<16xf32>
    %28 = vector.shape_cast %27 : vector<16xf32> to vector<16x1xf32>
    %29 = vector.broadcast %28 : vector<16x1xf32> to vector<16x128xf32>
    %30 = arith.divf %26, %29 : vector<16x128xf32>
    %c0_19 = arith.constant 0 : index
    %c0_20 = arith.constant 0 : index
    %31 = vector.load %arg8[%c0_19, %c0_20] : memref<16x128xf32, #tpu.memory_space<vmem>>, vector<16x128xf32>
    tpu.vector_store %arg8[%c0_19, %c0_20], %30 {strides = array<i32>} : memref<16x128xf32, #tpu.memory_space<vmem>>, vector<16x128xf32>,
    return
  }
  func.func @transform_0(%arg0: i32) -> (i32, i32) {
    %c0_i32 = arith.constant 0 : i32
    %c0_i32_0 = arith.constant 0 : i32
    return %arg0, %c0_i32 : i32, i32
  }
  func.func @transform_1(%arg0: i32) -> (i32, i32) {
    %c0_i32 = arith.constant 0 : i32
    %c0_i32_0 = arith.constant 0 : i32
    %c0_i32_1 = arith.constant 0 : i32
    return %c0_i32, %c0_i32_0 : i32, i32
  }
  func.func @transform_2(%arg0: i32) -> (i32, i32) {
    %c0_i32 = arith.constant 0 : i32
    %c0_i32_0 = arith.constant 0 : i32
    %c0_i32_1 = arith.constant 0 : i32
    return %c0_i32, %c0_i32_0 : i32, i32
  }
  func.func @transform_3(%arg0: i32) -> (i32, i32) {
    %c0_i32 = arith.constant 0 : i32
    %c0_i32_0 = arith.constant 0 : i32
    %c0_i32_1 = arith.constant 0 : i32
    return %c0_i32, %c0_i32_0 : i32, i32
  }
  func.func @transform_4(%arg0: i32) -> (i32, i32) {
    %c0_i32 = arith.constant 0 : i32
    %c0_i32_0 = arith.constant 0 : i32
    %c0_i32_1 = arith.constant 0 : i32
    return %c0_i32, %c0_i32_0 : i32, i32
  }
  func.func @transform_5(%arg0: i32) -> (i32, i32) {
    %c0_i32 = arith.constant 0 : i32
    %c0_i32_0 = arith.constant 0 : i32
    %c0_i32_1 = arith.constant 0 : i32
    return %c0_i32, %c0_i32_0 : i32, i32
  }
  func.func @transform_6(%arg0: i32) -> (i32, i32) {
    %c0_i32 = arith.constant 0 : i32
    %c0_i32_0 = arith.constant 0 : i32
    %c0_i32_1 = arith.constant 0 : i32
    return %c0_i32, %c0_i32_0 : i32, i32
  }
  func.func @transform_7(%arg0: i32) -> (i32, i32) {
    %c0_i32 = arith.constant 0 : i32
    %c0_i32_0 = arith.constant 0 : i32
    return %arg0, %c0_i32 : i32, i32
  }
}

</mosaic_0001>

<bundles_post_ra>
// kernel: tpu_custom_call.1
= control target key start
LH: loop header
LB: loop body
LE: loop exit
PB: predicated region body
PF: predicated region fallthrough
CT: control target
= control target key end

     0   :  { %12 = vsyncpa [#allocation3], 0  ;;  %s763_s0 = inlined_call_operand.hbm [shape: bf16[16,128], index: 0, kind: input, shape index: {}]   ;;  %s764_s1 = inlined_call_operand.hbm [shape: bf16[128,128], index: 1, kind: input, shape index: {}]   ;;  %s765_s2 = inlined_call_operand.vmem [shape: f32[1,128], index: 2, kind: input, shape index: {}]   ;;  %s766_s3 = inlined_call_operand.hbm [shape: bf16[128,128], index: 3, kind: input, shape index: {}]   ;;  %s767_s4 = inlined_call_operand.vmem [shape: f32[1,128], index: 4, kind: input, shape index: {}]   ;;  %s768_s5 = inlined_call_operand.hbm [shape: bf16[128,128], index: 5, kind: input, shape index: {}]   ;;  %s769_s6 = inlined_call_operand.vmem [shape: f32[1,128], index: 6, kind: input, shape index: {}]   ;;  %s770_s7 = inlined_call_operand.hbm [shape: f32[16,128], index: 7, kind: output, shape index: {}]  }
   0x1   :  { %13 = vsyncpa [#allocation6], 0 }
   0x2   :  { %14 = vsyncpa [#allocation9], 0 }
   0x3   :  { %15 = vsyncpa [#allocation4], 0  ;;  %s33_s26 = sshll.u32 %s764_s1, 4  ;;  %s690_s27 = smov [#allocation5]   ;;  %s34_s26 = int_to_ptr.hbm [resolvable:$true] %s33_s26 }
   0x4   :  { %s35_s28 = sshll.u32 %s690_s27, 4  ;;  %s20_s8 = sshll.u32 %s763_s0, 4  ;;  %s36_s28 = int_to_ptr.vmem [resolvable:$true] %s35_s28  ;;  %s21_s8 = int_to_ptr.hbm [resolvable:$true] %s20_s8 }
   0x5   :  { %s691_s9 = smov 64   ;;  %s692_s10 = smov 4  }
   0x6   :  { %41 = dma.hbm_to_vmem [thread:$0]  %s34_s26, 1024, %s36_s28, [#allocation6], %s691_s9, %s691_s9, %s692_s10  }
   0x7   :  { %s693_s11 = smov [#allocation2]   ;;  %s48_s15 = sshll.u32 %s766_s3, 4  ;;  %s49_s15 = int_to_ptr.hbm [resolvable:$true] %s48_s15 }
   0x8   :  { %s22_s12 = sshll.u32 %s693_s11, 4  ;;  %s63_s17 = sshll.u32 %s768_s5, 4  ;;  %s23_s12 = int_to_ptr.vmem [resolvable:$true] %s22_s12  ;;  %s64_s17 = int_to_ptr.hbm [resolvable:$true] %s63_s17 }
   0x9   :  { %28 = dma.hbm_to_vmem [thread:$0]  %s21_s8, 128, %s23_s12, [#allocation3], %s691_s9, %s691_s9, %s692_s10  }
   0xa   :  { %s694_s18 = smov [#allocation7]   ;;  %s695_s0 = smov [#allocation8]  }
   0xb   :  { %s50_s19 = sshll.u32 %s694_s18, 4  ;;  %s65_s20 = sshll.u32 %s695_s0, 4  ;;  %s51_s19 = int_to_ptr.vmem [resolvable:$true] %s50_s19  ;;  %s66_s20 = int_to_ptr.vmem [resolvable:$true] %s65_s20 }
   0xc   :  { %56 = dma.hbm_to_vmem [thread:$0]  %s49_s15, 1024, %s51_s19, [#allocation6], %s691_s9, %s691_s9, %s692_s10  }
   0xd   :  { %71 = dma.hbm_to_vmem [thread:$0]  %s64_s17, 1024, %s66_s20, [#allocation9], %s691_s9, %s691_s9, %s692_s10  }
   0xe   :  { %682 = dma.done.wait [#allocation3], 128  }
   0xf   :  { %683 = vsyncadd [#allocation3], 4294967168 }
  0x10   :  { %684 = dma.done.wait [#allocation6], 2048  }
  0x11   :  { %685 = vsyncadd [#allocation6], 4294965248 }
  0x12   :  { %686 = dma.done.wait [#allocation9], 1024  }
  0x13   :  { %687 = vsyncadd [#allocation9], 4294966272  ;;  %v525_v0 = vld [vmem:[#allocation5 + $0x38] sm:$0xff]  ;;  %v524_v1 = vld [vmem:[#allocation5 + $0x30] sm:$0xff]  ;;  %s402_s26 = sshll.u32 %s770_s7, 4  ;;  %s697_s27 = smov 128   ;;  %s403_s26 = int_to_ptr.hbm [resolvable:$true] %s402_s26 }
  0x14   :  { %166 = vmatpush.bf16.msra.mxu0 %v525_v0  ;;  %v533_v2 = vld [vmem:[#allocation7 + $0x38] sm:$0xff]  ;;  %v532_v3 = vld [vmem:[#allocation7 + $0x30] sm:$0xff]  ;;  %v523_v4 = vld [vmem:[#allocation5 + $0x28] sm:$0xff]  ;;  %s698_s28 = smov 8  }
  0x15   :  { %251 = vmatpush.bf16.msra.mxu1 %v533_v2  ;;  %v531_v5 = vld [vmem:[#allocation7 + $0x28] sm:$0xff]  ;;  %v522_v6 = vld [vmem:[#allocation5 + $0x20] sm:$0xff]  ;;  %v521_v8 = vld [vmem:[#allocation5 + $0x18] sm:$0xff] }
  0x16   :  { %v530_v7 = vld [vmem:[#allocation7 + $0x20] sm:$0xff]  ;;  %v520_v9 = vld [vmem:[#allocation5 + $0x10] sm:$0xff]  ;;  %v519_v10 = vld [vmem:[#allocation5 + $0x8] sm:$0xff] }
  0x17   :  { %v518_v11 = vld [vmem:[#allocation5] sm:$0xff]  ;;  %v517_v12 = vld [vmem:[#allocation2] sm:$0xff]  ;;  %v528_v14 = vld [vmem:[#allocation7 + $0x10] sm:$0xff] }
  0x18   :  { %167 = vmatpush.bf16.msra.mxu0 %v524_v1  ;;  %v529_v13 = vld [vmem:[#allocation7 + $0x18] sm:$0xff]  ;;  %v527_v15 = vld [vmem:[#allocation7 + $0x8] sm:$0xff]  ;;  %v526_v16 = vld [vmem:[#allocation7] sm:$0xff] }
  0x19   :  { %252 = vmatpush.bf16.msra.mxu1 %v532_v3  ;;  %v541_v17 = vld [vmem:[#allocation8 + $0x38] sm:$0xff]  ;;  %v540_v18 = vld [vmem:[#allocation8 + $0x30] sm:$0xff]  ;;  %v539_v19 = vld [vmem:[#allocation8 + $0x28] sm:$0xff] }
  0x1a   :  { %336 = vmatpush.bf16.msra.mxu2 %v541_v17  ;;  %v538_v20 = vld [vmem:[#allocation8 + $0x20] sm:$0xff]  ;;  %v551_v22 = vld [vmem:[%s765_s2] ss:$0 sm:$0xff]  ;;  %v536_v30 = vld [vmem:[#allocation8 + $0x10] sm:$0xff] }
  0x1b   :  { %v537_v29 = vld [vmem:[#allocation8 + $0x18] sm:$0xff]  ;;  %v535_v31 = vld [vmem:[#allocation8 + $0x8] sm:$0xff]  ;;  %v534_v32 = vld [vmem:[#allocation8] sm:$0xff] }
  0x1c   :  { %168 = vmatpush.bf16.msra.mxu0 %v523_v4  ;;  %v552_v34 = vld [vmem:[%s767_s4] ss:$0 sm:$0xff]  ;;  %s696_s4 = smov [#allocation10]  }
  0x1d   :  { %253 = vmatpush.bf16.msra.mxu1 %v531_v5  ;;  %v553_v41 = vld [vmem:[%s769_s6] ss:$0 sm:$0xff]  ;;  %s400_s6 = sshll.u32 %s696_s4, 4  ;;  %s401_s6 = int_to_ptr.vmem [resolvable:$true] %s400_s6 }
  0x1e   :  { %337 = vmatpush.bf16.msra.mxu2 %v540_v18 }
  0x20   :  { %169 = vmatpush.bf16.msra.mxu0 %v522_v6 }
  0x21   :  { %254 = vmatpush.bf16.msra.mxu1 %v530_v7 }
  0x22   :  { %338 = vmatpush.bf16.msra.mxu2 %v539_v19 }
  0x24   :  { %170 = vmatpush.bf16.msra.mxu0 %v521_v8 }
  0x25   :  { %255 = vmatpush.bf16.msra.mxu1 %v529_v13 }
  0x26   :  { %339 = vmatpush.bf16.msra.mxu2 %v538_v20 }
  0x28   :  { %171 = vmatpush.bf16.msra.mxu0 %v520_v9 }
  0x29   :  { %256 = vmatpush.bf16.msra.mxu1 %v528_v14 }
  0x2a   :  { %340 = vmatpush.bf16.msra.mxu2 %v537_v29 }
  0x2c   :  { %172 = vmatpush.bf16.msra.mxu0 %v519_v10 }
  0x2d   :  { %257 = vmatpush.bf16.msra.mxu1 %v527_v15 }
  0x2e   :  { %341 = vmatpush.bf16.msra.mxu2 %v536_v30 }
  0x30   :  { %173 = vmatpush.bf16.msra.mxu0 %v518_v11 }
  0x31   :  { %258 = vmatpush.bf16.msra.mxu1 %v526_v16 }
  0x32   :  { %342 = vmatpush.bf16.msra.mxu2 %v535_v31 }
  0x33   :  { %174 = vmatmul.bf16.vlgmr.msra.gmra.mxu0 %v517_v12 }
  0x36   :  { %343 = vmatpush.bf16.msra.mxu2 %v534_v32 }
  0xb0   :  { %v175_v21 = vpop.f32.mrf.mxu0 }
  0xb1   :  { %v176_v23 = vadd.f32 %v551_v22, %v175_v21 }
  0xb3   :  { %v180_v26 = vmax.f32 %v176_v23, 0.0 }
  0xb8   :  { %v177_v24 = vpop.f32.mrf.mxu0 }
  0xb9   :  { %v178_v25 = vadd.f32 %v551_v22, %v177_v24 }
  0xbb   :  { %v181_v27 = vmax.f32 %v178_v25, 0.0 }
  0xbd   :  { %v182_v28 = vpack.c.bf16 %v181_v27, %v180_v26 }
  0xbf   :  { %259 = vmatmul.bf16.vlgmr.msra.gmra.mxu1 %v182_v28 }
 0x13c   :  { %v260_v33 = vpop.f32.mrf.mxu1 }
 0x13d   :  { %v261_v35 = vadd.f32 %v552_v34, %v260_v33 }
 0x13f   :  { %v265_v38 = vmax.f32 %v261_v35, 0.0 }
 0x144   :  { %v262_v36 = vpop.f32.mrf.mxu1 }
 0x145   :  { %v263_v37 = vadd.f32 %v552_v34, %v262_v36 }
 0x147   :  { %v266_v39 = vmax.f32 %v263_v37, 0.0 }
 0x149   :  { %v267_v40 = vpack.c.bf16 %v266_v39, %v265_v38 }
 0x14b   :  { %344 = vmatmul.bf16.vlgmr.msra.gmra.mxu2 %v267_v40 }
 0x1ce   :  { %v345_v42 = vpop.f32.mrf.mxu2 }
 0x1cf   :  { %v346_v43 = vadd.f32 %v553_v41, %v345_v42 }
 0x1d1   :  { %350 = vmax.xlane.f32.xlu0 %v346_v43 }
 0x1d6   :  { %v347_v44 = vpop.f32.mrf.mxu2 }
 0x1d7   :  { %v348_v45 = vadd.f32 %v553_v41, %v347_v44 }
 0x1d9   :  { %352 = vmax.xlane.f32.xlu0 %v348_v45 }
 0x244   :  { %v351_v46 = vpop.xlane.xlu0 %350 }
 0x245   :  { %v354_v47 = vsub.f32 %v346_v43, %v351_v46 }
 0x247   :  { %v356_v48 = vmul.f32 1.442695, %v354_v47 }
 0x249   :  { %554 = vpow2.f32 %v356_v48 }
 0x24c   :  { %v353_v49 = vpop.xlane.xlu0 %352 }
 0x24d   :  { %v355_v50 = vsub.f32 %v348_v45, %v353_v49 }
 0x24f   :  { %v555_v51 = vpop.eup %554  ;;  %v358_v52 = vmul.f32 1.442695, %v355_v50 }
 0x250   :  { %360 = vadd.xlane.f32.xlu1 %v555_v51 }
 0x251   :  { %556 = vpow2.f32 %v358_v52 }
 0x257   :  { %v557_v53 = vpop.eup %556 }
 0x258   :  { %362 = vadd.xlane.f32.xlu1 %v557_v53 }
 0x2c3   :  { %v361_v54 = vpop.xlane.xlu1 %360 }
 0x2c4   :  { %558 = vrcp.f32 %v361_v54  ;;  %v375_v59 = vand.u32 2147483648, %v361_v54  ;;  %v373_v61 = vand.u32 2147483647, %v361_v54  ;;  %vm369_vm1 = vweird.f32 %v361_v54 }
 0x2c6   :  { %v376_v0 = vor.u32 1.1754944e-38, %v375_v59  ;;  %vm374_vm3 = vcmp.eq.f32.partialorder %v373_v61, 8.507059e+37 }
 0x2ca   :  { %v559_v55 = vpop.eup %558 }
 0x2cb   :  { %v365_v56 = vmul.f32 %v559_v55, %v361_v54  ;;  %v363_v57 = vpop.xlane.xlu1 %362  ;;  %vm370_vm0 = vweird.f32 %v559_v55 }
 0x2cc   :  { %560 = vrcp.f32 %v363_v57  ;;  %vm371_vm2 = vmor %vm369_vm1, %vm370_vm0  ;;  %v390_v6 = vand.u32 2147483648, %v363_v57  ;;  %v388_v8 = vand.u32 2147483647, %v363_v57  ;;  %vm384_vm5 = vweird.f32 %v363_v57 }
 0x2cd   :  { %v366_v58 = vsub.f32 1.0, %v365_v56 }
 0x2ce   :  { %v391_v10 = vor.u32 1.1754944e-38, %v390_v6  ;;  %vm389_vm7 = vcmp.eq.f32.partialorder %v388_v8, 8.507059e+37 }
 0x2cf   :  { %v367_v60 = vmul.f32 %v559_v55, %v366_v58 }
 0x2d1   :  { %v368_v62 = vadd.f32 %v559_v55, %v367_v60 }
 0x2d2   :  { %v561_v63 = vpop.eup %560 }
 0x2d3   :  { %v372_v1 = vsel %vm371_vm2, %v559_v55, %v368_v62  ;;  %v380_v2 = vmul.f32 %v561_v63, %v363_v57  ;;  %vm385_vm4 = vweird.f32 %v561_v63 }
 0x2d4   :  { %v377_v3 = vsel %vm374_vm3, %v376_v0, %v372_v1  ;;  %vm386_vm6 = vmor %vm384_vm5, %vm385_vm4 }
 0x2d5   :  { %v378_v4 = vmul.f32 %v555_v51, %v377_v3  ;;  %v381_v5 = vsub.f32 1.0, %v380_v2 }
 0x2d7   :  { %394 = vst [vmem:[#allocation10] sm:$0xff] %v378_v4  ;;  %v382_v7 = vmul.f32 %v561_v63, %v381_v5 }
 0x2d9   :  { %v383_v9 = vadd.f32 %v561_v63, %v382_v7 }
 0x2db   :  { %v387_v11 = vsel %vm386_vm6, %v561_v63, %v383_v9 }
 0x2dc   :  { %v392_v12 = vsel %vm389_vm7, %v391_v10, %v387_v11 }
 0x2dd   :  { %v393_v13 = vmul.f32 %v557_v53, %v392_v12 }
 0x2df   :  { %395 = vst [vmem:[#allocation10 + $0x8] sm:$0xff] %v393_v13 }
 0x2e0   :  { %408 = dma.vmem_to_hbm [thread:$0]  %s401_s6, 256, %s403_s26, [#allocation4], %s697_s27, %s697_s27, %s698_s28  }
 0x2e1   :  { %688 = dma.done.wait [#allocation4], 256  }
 0x2e2   :  { %689 = vsyncadd [#allocation4], 4294967040 }
 0x2e3   :  { %413 = vsyncpa [#allocation3], 1 }
 0x2e4   :  { %414 = vsyncpa [#allocation6], 1 }
 0x2e5   :  { %415 = vsyncpa [#allocation9], 1 }
 0x2e6   :  { %416 = vsyncpa [#allocation4], 1 }

</bundles_post_ra>
